<compile_context>
chip_gen: v7x
topology: tpu7x:2x2x1
jax: 0.10.0
libtpu: 0.0.40
codegen_flags: <defaults>
</compile_context>

<pallas_src>
import jax
import jax.numpy as jnp
from jax import lax
from jax.experimental import pallas as pl
from jax.experimental.pallas import tpu as pltpu


# ----------------------------------- kernel -----------------------------------
def _make_kernel(same_shape, nb, H):
    def kernel(x_ref, wb13_ref, wb2_ref, o_ref, h1p_ref):
        n1 = o_ref.shape[-1]                 # W * Cout (lane-dense)

        # Zero the two H-halo rows of the h1 scratch. Done every grid step so
        # correctness does not depend on scratch state from other cores/steps.
        zhalo = jnp.zeros((nb, 1, n1), h1p_ref.dtype)
        h1p_ref[:, 0:1, :] = zhalo
        h1p_ref[:, H + 1:H + 2, :] = zhalo

        for b in range(nb):                  # static unroll over the batch tile
            # ---- conv1 (+ fused skip conv3): 3 banded MXU matmuls, K = W*Cin
            acc13 = jnp.zeros((H, wb13_ref.shape[-1]), jnp.float32)
            for kh in range(3):
                a = x_ref[b, kh:kh + H, :]                       # (H, W*Cin) bf16
                acc13 = acc13 + jnp.dot(a, wb13_ref[kh],
                                        preferred_element_type=jnp.float32)

            if same_shape:
                h1 = jnp.maximum(acc13, 0.0)
                # identity skip (Cin == Cout so W*Cin == n1)
                skip = x_ref[b, 1:1 + H, :].astype(jnp.float32)
            else:
                h1 = jnp.maximum(acc13[:, :n1], 0.0)
                skip = acc13[:, n1:]                             # fused conv3

            # ---- h1 with H halo in f32 VMEM scratch ------------------------
            h1p_ref[b, 1:1 + H, :] = h1

            # ---- conv2: 3 banded MXU matmuls, K = W*Cout, accum onto skip ---
            acc2 = skip
            for kh in range(3):
                a2 = h1p_ref[b, kh:kh + H, :].astype(jnp.bfloat16)  # (H, W*Cout)
                acc2 = acc2 + jnp.dot(a2, wb2_ref[kh],
                                      preferred_element_type=jnp.float32)

            o_ref[b] = jnp.maximum(acc2, 0.0).astype(o_ref.dtype)

    return kernel


# ---------------------------------- wrapper -----------------------------------
def _band_weights(w_oihw, W, dtype=jnp.bfloat16):
    """OIHW 3x3 conv weights -> banded matrices (3, W*Cin, W*Cout).

    B[kh][(w', ci), (w, co)] = w[co, ci, kh, kw] where w' = w + kw - 1; taps
    falling outside [0, W) are simply absent, which implements the width-axis
    zero padding inside the matmul contraction.
    """
    w = jnp.transpose(w_oihw, (2, 3, 1, 0)).astype(dtype)      # HWIO (3,3,Ci,Co)
    ci, co = w.shape[2], w.shape[3]
    mats = []
    for kh in range(3):
        bk = jnp.zeros((W * ci, W * co), dtype)
        for kw in range(3):
            # S[w', w] = 1  iff  w' == w + (kw - 1)
            shift = jnp.eye(W, k=-(kw - 1), dtype=dtype)
            bk = bk + jnp.kron(shift, w[kh, kw])
        mats.append(bk)
    return jnp.stack(mats)                                     # (3, W*Ci, W*Co)


def res_block(x_nchw, w1_oihw, w2_oihw, w3_oihw=None, *, same_shape=True):
    """Pallas forward pass matching the PyTorch `Block.forward`."""
    N, Cin, H, W = x_nchw.shape
    Cout = w1_oihw.shape[0]
    if same_shape:
        assert Cin == Cout, "identity skip requires Cin == Cout"
    elif w3_oihw is None:
        raise ValueError("same_shape=False requires the skip conv weights w3")

    # activations: NCHW -> (N, H+2, W*Cin), bf16 (f32 accumulation in-kernel).
    x = jnp.transpose(x_nchw, (0, 2, 3, 1)).astype(jnp.bfloat16)
    x = jnp.pad(x, ((0, 0), (1, 1), (0, 0), (0, 0)))           # H halo only
    x = x.reshape(N, H + 2, W * Cin)

    # weights: banded (3, W*Ci, W*Co) bf16; conv1 & conv3 fused along outputs.
    wb1 = _band_weights(w1_oihw, W)
    wb2 = _band_weights(w2_oihw, W)
    wb13 = wb1 if same_shape else jnp.concatenate(
        [wb1, _band_weights(w3_oihw, W)], axis=-1)

    # batch tile: amortize per-step pipeline overhead, keep the unroll small.
    nb = max(d for d in range(1, min(N, 8) + 1) if N % d == 0)

    n1 = W * Cout
    matmul_flops = 2 * N * H * 3 * ((W * Cin) * wb13.shape[-1] + n1 * n1)
    bytes_accessed = (x.size * 2 + wb13.size * 2 + wb2.size * 2
                      + N * H * n1 * 4)

    out = pl.pallas_call(
        _make_kernel(same_shape, nb, H),
        out_shape=jax.ShapeDtypeStruct((N, H, n1), jnp.float32),
        grid_spec=pltpu.PrefetchScalarGridSpec(
            num_scalar_prefetch=0,
            grid=(N // nb,),
            in_specs=[
                pl.BlockSpec((nb, H + 2, W * Cin), lambda n: (n, 0, 0)),
                pl.BlockSpec(wb13.shape, lambda n: (0, 0, 0)),
                pl.BlockSpec(wb2.shape, lambda n: (0, 0, 0)),
            ],
            out_specs=pl.BlockSpec((nb, H, n1), lambda n: (n, 0, 0)),
            scratch_shapes=[pltpu.VMEM((nb, H + 2, n1), jnp.float32)],
        ),
        compiler_params=pltpu.CompilerParams(
            dimension_semantics=("parallel",),     # batch axis across cores
        ),
        cost_estimate=pl.CostEstimate(
            flops=int(matmul_flops), transcendentals=0,
            bytes_accessed=int(bytes_accessed)),
    )(x, wb13, wb2)

    # (N, H, W*Cout) -> PyTorch NCHW
    return jnp.transpose(out.reshape(N, H, W, Cout), (0, 3, 1, 2))


# ----------------------------- pure-JAX references ----------------------------
def _conv_ref(x, w):  # NCHW activations, OIHW weights, padding=1, no bias
    return lax.conv_general_dilated(
        x, w, window_strides=(1, 1), padding=((1, 1), (1, 1)),
        dimension_numbers=("NCHW", "OIHW", "NCHW"),
        preferred_element_type=jnp.float32)


def _block_ref(x, w1, w2, w3=None, *, same_shape=True, compute_dtype=jnp.float32):
    """Reference forward. compute_dtype=bf16 mirrors the kernel's MXU math."""
    xc = x.astype(compute_dtype)
    h1 = jnp.maximum(_conv_ref(xc, w1.astype(compute_dtype)), 0.0)       # f32
    out = _conv_ref(h1.astype(compute_dtype), w2.astype(compute_dtype))  # f32
    if same_shape:
        skip = xc.astype(jnp.float32)
    else:
        skip = _conv_ref(xc, w3.astype(compute_dtype))
    return jnp.maximum(out + skip, 0.0)


if __name__ == "__main__":
    key = jax.random.PRNGKey(0)
    k_x, k1, k2, k3, k_x2, k4, k5 = jax.random.split(key, 7)

    # ---- case 1: same_shape=False (projection skip via conv3) ---------------
    N, Cin, Cout, H, W = 2, 4, 8, 16, 16
    x = jax.random.normal(k_x, (N, Cin, H, W), jnp.float32)
    w1 = 0.1 * jax.random.normal(k1, (Cout, Cin, 3, 3), jnp.float32)
    w2 = 0.1 * jax.random.normal(k2, (Cout, Cout, 3, 3), jnp.float32)
    w3 = 0.1 * jax.random.normal(k3, (Cout, Cin, 3, 3), jnp.float32)

    block_proj = jax.jit(
        lambda a, b, c, d: res_block(a, b, c, d, same_shape=False))
    out = jax.block_until_ready(block_proj(x, w1, w2, w3))
    ref_bf16 = _block_ref(x, w1, w2, w3, same_shape=False,
                          compute_dtype=jnp.bfloat16)
    ref_f32 = _block_ref(x, w1, w2, w3, same_shape=False)
    assert out.shape == (N, Cout, H, W)
    assert jnp.allclose(out, ref_bf16, atol=1e-2, rtol=1e-2)   # kernel-math mirror
    assert jnp.allclose(out, ref_f32, atol=6e-2, rtol=6e-2)    # vs full f32 ref

    # ---- case 2: same_shape=True (identity skip, Cin == Cout) ---------------
    C = 8
    x2 = jax.random.normal(k_x2, (N, C, H, W), jnp.float32)
    w1b = 0.1 * jax.random.normal(k4, (C, C, 3, 3), jnp.float32)
    w2b = 0.1 * jax.random.normal(k5, (C, C, 3, 3), jnp.float32)

    block_id = jax.jit(lambda a, b, c: res_block(a, b, c, same_shape=True))
    out2 = jax.block_until_ready(block_id(x2, w1b, w2b))
    ref2_bf16 = _block_ref(x2, w1b, w2b, same_shape=True,
                           compute_dtype=jnp.bfloat16)
    ref2_f32 = _block_ref(x2, w1b, w2b, same_shape=True)
    assert out2.shape == (N, C, H, W)
    assert jnp.allclose(out2, ref2_bf16, atol=1e-2, rtol=1e-2)
    assert jnp.allclose(out2, ref2_f32, atol=6e-2, rtol=6e-2)

    print("KERNEL_OK")
</pallas_src>

<mosaic_0001>
module attributes {stable_mosaic.version = 11 : i64} {
  func.func @kernel(%arg0: i32, %arg1: memref<2x18x64xbf16, #tpu.memory_space<vmem>>, %arg2: memref<3x64x256xbf16, #tpu.memory_space<vmem>>, %arg3: memref<3x128x128xbf16, #tpu.memory_space<vmem>>, %arg4: memref<2x16x128xf32, #tpu.memory_space<vmem>>, %arg5: memref<2x18x128xf32, #tpu.memory_space<vmem>>) attributes {dimension_semantics = [#tpu.dimension_semantics<parallel>], iteration_bounds = array<i64: 1>, scalar_prefetch = 0 : i64, scratch_operands = 1 : i64, tpu.core_type = #tpu.core_type<tc>, window_params = [{transform_indices = @transform_0, window_bounds = array<i64: 2, 18, 64>}, {pipeline_mode = #tpu.pipeline_mode<synchronous>, transform_indices = @transform_1, window_bounds = array<i64: 3, 64, 256>}, {pipeline_mode = #tpu.pipeline_mode<synchronous>, transform_indices = @transform_2, window_bounds = array<i64: 3, 128, 128>}, {transform_indices = @transform_3, window_bounds = array<i64: 2, 16, 128>}]} {
    %cst = arith.constant 0.000000e+00 : f32
    %0 = vector.broadcast %cst : f32 to vector<2x1x128xf32>
    %c0 = arith.constant 0 : index
    %c0_0 = arith.constant 0 : index
    %c0_1 = arith.constant 0 : index
    %1 = vector.load %arg5[%c0, %c0_0, %c0_1] : memref<2x18x128xf32, #tpu.memory_space<vmem>>, vector<2x1x128xf32>
    tpu.vector_store %arg5[%c0, %c0_0, %c0_1], %0 {strides = array<i32>} : memref<2x18x128xf32, #tpu.memory_space<vmem>>, vector<2x1x128xf32>,
    %c0_2 = arith.constant 0 : index
    %c17 = arith.constant 17 : index
    %c0_3 = arith.constant 0 : index
    %2 = vector.load %arg5[%c0_2, %c17, %c0_3] : memref<2x18x128xf32, #tpu.memory_space<vmem>>, vector<2x1x128xf32>
    tpu.vector_store %arg5[%c0_2, %c17, %c0_3], %0 {strides = array<i32>} : memref<2x18x128xf32, #tpu.memory_space<vmem>>, vector<2x1x128xf32>,
    %cst_4 = arith.constant 0.000000e+00 : f32
    %3 = vector.broadcast %cst_4 : f32 to vector<16x256xf32>
    %c0_5 = arith.constant 0 : index
    %c0_6 = arith.constant 0 : index
    %c0_7 = arith.constant 0 : index
    %4 = vector.load %arg1[%c0_5, %c0_6, %c0_7] : memref<2x18x64xbf16, #tpu.memory_space<vmem>>, vector<1x16x64xbf16>
    %5 = vector.shape_cast %4 : vector<1x16x64xbf16> to vector<16x64xbf16>
    %c0_8 = arith.constant 0 : index
    %c0_9 = arith.constant 0 : index
    %c0_10 = arith.constant 0 : index
    %6 = vector.load %arg2[%c0_8, %c0_9, %c0_10] : memref<3x64x256xbf16, #tpu.memory_space<vmem>>, vector<1x64x256xbf16>
    %7 = vector.shape_cast %6 : vector<1x64x256xbf16> to vector<64x256xbf16>
    %cst_11 = arith.constant dense<0.000000e+00> : vector<16x256xf32>
    %8 = tpu.matmul %5, %7, %cst_11 {dimension_numbers = #tpu.dot_dimension_numbers<[1], [0], [0], [1], [0, 0, 1, 1], [], []>} : vector<16x64xbf16>, vector<64x256xbf16>, vector<16x256xf32> -> vector<16x256xf32>
    %9 = arith.addf %3, %8 : vector<16x256xf32>
    %c0_12 = arith.constant 0 : index
    %c1 = arith.constant 1 : index
    %c0_13 = arith.constant 0 : index
    %10 = vector.load %arg1[%c0_12, %c1, %c0_13] : memref<2x18x64xbf16, #tpu.memory_space<vmem>>, vector<1x16x64xbf16>
    %11 = vector.shape_cast %10 : vector<1x16x64xbf16> to vector<16x64xbf16>
    %c1_14 = arith.constant 1 : index
    %c0_15 = arith.constant 0 : index
    %c0_16 = arith.constant 0 : index
    %12 = vector.load %arg2[%c1_14, %c0_15, %c0_16] : memref<3x64x256xbf16, #tpu.memory_space<vmem>>, vector<1x64x256xbf16>
    %13 = vector.shape_cast %12 : vector<1x64x256xbf16> to vector<64x256xbf16>
    %cst_17 = arith.constant dense<0.000000e+00> : vector<16x256xf32>
    %14 = tpu.matmul %11, %13, %cst_17 {dimension_numbers = #tpu.dot_dimension_numbers<[1], [0], [0], [1], [0, 0, 1, 1], [], []>} : vector<16x64xbf16>, vector<64x256xbf16>, vector<16x256xf32> -> vector<16x256xf32>
    %15 = arith.addf %9, %14 : vector<16x256xf32>
    %c0_18 = arith.constant 0 : index
    %c2 = arith.constant 2 : index
    %c0_19 = arith.constant 0 : index
    %16 = vector.load %arg1[%c0_18, %c2, %c0_19] : memref<2x18x64xbf16, #tpu.memory_space<vmem>>, vector<1x16x64xbf16>
    %17 = vector.shape_cast %16 : vector<1x16x64xbf16> to vector<16x64xbf16>
    %c2_20 = arith.constant 2 : index
    %c0_21 = arith.constant 0 : index
    %c0_22 = arith.constant 0 : index
    %18 = vector.load %arg2[%c2_20, %c0_21, %c0_22] : memref<3x64x256xbf16, #tpu.memory_space<vmem>>, vector<1x64x256xbf16>
    %19 = vector.shape_cast %18 : vector<1x64x256xbf16> to vector<64x256xbf16>
    %cst_23 = arith.constant dense<0.000000e+00> : vector<16x256xf32>
    %20 = tpu.matmul %17, %19, %cst_23 {dimension_numbers = #tpu.dot_dimension_numbers<[1], [0], [0], [1], [0, 0, 1, 1], [], []>} : vector<16x64xbf16>, vector<64x256xbf16>, vector<16x256xf32> -> vector<16x256xf32>
    %21 = arith.addf %15, %20 : vector<16x256xf32>
    %22 = vector.extract_strided_slice %21 {offsets = [0, 0], sizes = [16, 128], strides = [1, 1]} : vector<16x256xf32> to vector<16x128xf32>
    %cst_24 = arith.constant 0.000000e+00 : f32
    %23 = vector.broadcast %cst_24 : f32 to vector<16x128xf32>
    %24 = arith.maximumf %22, %23 : vector<16x128xf32>
    %25 = vector.extract_strided_slice %21 {offsets = [0, 128], sizes = [16, 128], strides = [1, 1]} : vector<16x256xf32> to vector<16x128xf32>
    %c0_25 = arith.constant 0 : index
    %c1_26 = arith.constant 1 : index
    %c0_27 = arith.constant 0 : index
    %26 = vector.load %arg5[%c0_25, %c1_26, %c0_27] : memref<2x18x128xf32, #tpu.memory_space<vmem>>, vector<1x16x128xf32>
    %27 = vector.shape_cast %26 : vector<1x16x128xf32> to vector<16x128xf32>
    %28 = vector.shape_cast %24 : vector<16x128xf32> to vector<1x16x128xf32>
    tpu.vector_store %arg5[%c0_25, %c1_26, %c0_27], %28 {strides = array<i32>} : memref<2x18x128xf32, #tpu.memory_space<vmem>>, vector<1x16x128xf32>,
    %c0_28 = arith.constant 0 : index
    %c0_29 = arith.constant 0 : index
    %c0_30 = arith.constant 0 : index
    %29 = vector.load %arg5[%c0_28, %c0_29, %c0_30] : memref<2x18x128xf32, #tpu.memory_space<vmem>>, vector<1x16x128xf32>
    %30 = vector.shape_cast %29 : vector<1x16x128xf32> to vector<16x128xf32>
    %31 = arith.truncf %30 : vector<16x128xf32> to vector<16x128xbf16>
    %c0_31 = arith.constant 0 : index
    %c0_32 = arith.constant 0 : index
    %c0_33 = arith.constant 0 : index
    %32 = vector.load %arg3[%c0_31, %c0_32, %c0_33] : memref<3x128x128xbf16, #tpu.memory_space<vmem>>, vector<1x128x128xbf16>
    %33 = vector.shape_cast %32 : vector<1x128x128xbf16> to vector<128x128xbf16>
    %cst_34 = arith.constant dense<0.000000e+00> : vector<16x128xf32>
    %34 = tpu.matmul %31, %33, %cst_34 {dimension_numbers = #tpu.dot_dimension_numbers<[1], [0], [0], [1], [0, 0, 1, 1], [], []>} : vector<16x128xbf16>, vector<128x128xbf16>, vector<16x128xf32> -> vector<16x128xf32>
    %35 = arith.addf %25, %34 : vector<16x128xf32>
    %c0_35 = arith.constant 0 : index
    %c1_36 = arith.constant 1 : index
    %c0_37 = arith.constant 0 : index
    %36 = vector.load %arg5[%c0_35, %c1_36, %c0_37] : memref<2x18x128xf32, #tpu.memory_space<vmem>>, vector<1x16x128xf32>
    %37 = vector.shape_cast %36 : vector<1x16x128xf32> to vector<16x128xf32>
    %38 = arith.truncf %37 : vector<16x128xf32> to vector<16x128xbf16>
    %c1_38 = arith.constant 1 : index
    %c0_39 = arith.constant 0 : index
    %c0_40 = arith.constant 0 : index
    %39 = vector.load %arg3[%c1_38, %c0_39, %c0_40] : memref<3x128x128xbf16, #tpu.memory_space<vmem>>, vector<1x128x128xbf16>
    %40 = vector.shape_cast %39 : vector<1x128x128xbf16> to vector<128x128xbf16>
    %cst_41 = arith.constant dense<0.000000e+00> : vector<16x128xf32>
    %41 = tpu.matmul %38, %40, %cst_41 {dimension_numbers = #tpu.dot_dimension_numbers<[1], [0], [0], [1], [0, 0, 1, 1], [], []>} : vector<16x128xbf16>, vector<128x128xbf16>, vector<16x128xf32> -> vector<16x128xf32>
    %42 = arith.addf %35, %41 : vector<16x128xf32>
    %c0_42 = arith.constant 0 : index
    %c2_43 = arith.constant 2 : index
    %c0_44 = arith.constant 0 : index
    %43 = vector.load %arg5[%c0_42, %c2_43, %c0_44] : memref<2x18x128xf32, #tpu.memory_space<vmem>>, vector<1x16x128xf32>
    %44 = vector.shape_cast %43 : vector<1x16x128xf32> to vector<16x128xf32>
    %45 = arith.truncf %44 : vector<16x128xf32> to vector<16x128xbf16>
    %c2_45 = arith.constant 2 : index
    %c0_46 = arith.constant 0 : index
    %c0_47 = arith.constant 0 : index
    %46 = vector.load %arg3[%c2_45, %c0_46, %c0_47] : memref<3x128x128xbf16, #tpu.memory_space<vmem>>, vector<1x128x128xbf16>
    %47 = vector.shape_cast %46 : vector<1x128x128xbf16> to vector<128x128xbf16>
    %cst_48 = arith.constant dense<0.000000e+00> : vector<16x128xf32>
    %48 = tpu.matmul %45, %47, %cst_48 {dimension_numbers = #tpu.dot_dimension_numbers<[1], [0], [0], [1], [0, 0, 1, 1], [], []>} : vector<16x128xbf16>, vector<128x128xbf16>, vector<16x128xf32> -> vector<16x128xf32>
    %49 = arith.addf %42, %48 : vector<16x128xf32>
    %cst_49 = arith.constant 0.000000e+00 : f32
    %50 = vector.broadcast %cst_49 : f32 to vector<16x128xf32>
    %51 = arith.maximumf %49, %50 : vector<16x128xf32>
    %c0_50 = arith.constant 0 : index
    %c0_51 = arith.constant 0 : index
    %c0_52 = arith.constant 0 : index
    %52 = vector.load %arg4[%c0_50, %c0_51, %c0_52] : memref<2x16x128xf32, #tpu.memory_space<vmem>>, vector<1x16x128xf32>
    %53 = vector.shape_cast %52 : vector<1x16x128xf32> to vector<16x128xf32>
    %54 = vector.shape_cast %51 : vector<16x128xf32> to vector<1x16x128xf32>
    tpu.vector_store %arg4[%c0_50, %c0_51, %c0_52], %54 {strides = array<i32>} : memref<2x16x128xf32, #tpu.memory_space<vmem>>, vector<1x16x128xf32>,
    %cst_53 = arith.constant 0.000000e+00 : f32
    %55 = vector.broadcast %cst_53 : f32 to vector<16x256xf32>
    %c1_54 = arith.constant 1 : index
    %c0_55 = arith.constant 0 : index
    %c0_56 = arith.constant 0 : index
    %56 = vector.load %arg1[%c1_54, %c0_55, %c0_56] : memref<2x18x64xbf16, #tpu.memory_space<vmem>>, vector<1x16x64xbf16>
    %57 = vector.shape_cast %56 : vector<1x16x64xbf16> to vector<16x64xbf16>
    %c0_57 = arith.constant 0 : index
    %c0_58 = arith.constant 0 : index
    %c0_59 = arith.constant 0 : index
    %58 = vector.load %arg2[%c0_57, %c0_58, %c0_59] : memref<3x64x256xbf16, #tpu.memory_space<vmem>>, vector<1x64x256xbf16>
    %59 = vector.shape_cast %58 : vector<1x64x256xbf16> to vector<64x256xbf16>
    %cst_60 = arith.constant dense<0.000000e+00> : vector<16x256xf32>
    %60 = tpu.matmul %57, %59, %cst_60 {dimension_numbers = #tpu.dot_dimension_numbers<[1], [0], [0], [1], [0, 0, 1, 1], [], []>} : vector<16x64xbf16>, vector<64x256xbf16>, vector<16x256xf32> -> vector<16x256xf32>
    %61 = arith.addf %55, %60 : vector<16x256xf32>
    %c1_61 = arith.constant 1 : index
    %c1_62 = arith.constant 1 : index
    %c0_63 = arith.constant 0 : index
    %62 = vector.load %arg1[%c1_61, %c1_62, %c0_63] : memref<2x18x64xbf16, #tpu.memory_space<vmem>>, vector<1x16x64xbf16>
    %63 = vector.shape_cast %62 : vector<1x16x64xbf16> to vector<16x64xbf16>
    %c1_64 = arith.constant 1 : index
    %c0_65 = arith.constant 0 : index
    %c0_66 = arith.constant 0 : index
    %64 = vector.load %arg2[%c1_64, %c0_65, %c0_66] : memref<3x64x256xbf16, #tpu.memory_space<vmem>>, vector<1x64x256xbf16>
    %65 = vector.shape_cast %64 : vector<1x64x256xbf16> to vector<64x256xbf16>
    %cst_67 = arith.constant dense<0.000000e+00> : vector<16x256xf32>
    %66 = tpu.matmul %63, %65, %cst_67 {dimension_numbers = #tpu.dot_dimension_numbers<[1], [0], [0], [1], [0, 0, 1, 1], [], []>} : vector<16x64xbf16>, vector<64x256xbf16>, vector<16x256xf32> -> vector<16x256xf32>
    %67 = arith.addf %61, %66 : vector<16x256xf32>
    %c1_68 = arith.constant 1 : index
    %c2_69 = arith.constant 2 : index
    %c0_70 = arith.constant 0 : index
    %68 = vector.load %arg1[%c1_68, %c2_69, %c0_70] : memref<2x18x64xbf16, #tpu.memory_space<vmem>>, vector<1x16x64xbf16>
    %69 = vector.shape_cast %68 : vector<1x16x64xbf16> to vector<16x64xbf16>
    %c2_71 = arith.constant 2 : index
    %c0_72 = arith.constant 0 : index
    %c0_73 = arith.constant 0 : index
    %70 = vector.load %arg2[%c2_71, %c0_72, %c0_73] : memref<3x64x256xbf16, #tpu.memory_space<vmem>>, vector<1x64x256xbf16>
    %71 = vector.shape_cast %70 : vector<1x64x256xbf16> to vector<64x256xbf16>
    %cst_74 = arith.constant dense<0.000000e+00> : vector<16x256xf32>
    %72 = tpu.matmul %69, %71, %cst_74 {dimension_numbers = #tpu.dot_dimension_numbers<[1], [0], [0], [1], [0, 0, 1, 1], [], []>} : vector<16x64xbf16>, vector<64x256xbf16>, vector<16x256xf32> -> vector<16x256xf32>
    %73 = arith.addf %67, %72 : vector<16x256xf32>
    %74 = vector.extract_strided_slice %73 {offsets = [0, 0], sizes = [16, 128], strides = [1, 1]} : vector<16x256xf32> to vector<16x128xf32>
    %cst_75 = arith.constant 0.000000e+00 : f32
    %75 = vector.broadcast %cst_75 : f32 to vector<16x128xf32>
    %76 = arith.maximumf %74, %75 : vector<16x128xf32>
    %77 = vector.extract_strided_slice %73 {offsets = [0, 128], sizes = [16, 128], strides = [1, 1]} : vector<16x256xf32> to vector<16x128xf32>
    %c1_76 = arith.constant 1 : index
    %c1_77 = arith.constant 1 : index
    %c0_78 = arith.constant 0 : index
    %78 = vector.load %arg5[%c1_76, %c1_77, %c0_78] : memref<2x18x128xf32, #tpu.memory_space<vmem>>, vector<1x16x128xf32>
    %79 = vector.shape_cast %78 : vector<1x16x128xf32> to vector<16x128xf32>
    %80 = vector.shape_cast %76 : vector<16x128xf32> to vector<1x16x128xf32>
    tpu.vector_store %arg5[%c1_76, %c1_77, %c0_78], %80 {strides = array<i32>} : memref<2x18x128xf32, #tpu.memory_space<vmem>>, vector<1x16x128xf32>,
    %c1_79 = arith.constant 1 : index
    %c0_80 = arith.constant 0 : index
    %c0_81 = arith.constant 0 : index
    %81 = vector.load %arg5[%c1_79, %c0_80, %c0_81] : memref<2x18x128xf32, #tpu.memory_space<vmem>>, vector<1x16x128xf32>
    %82 = vector.shape_cast %81 : vector<1x16x128xf32> to vector<16x128xf32>
    %83 = arith.truncf %82 : vector<16x128xf32> to vector<16x128xbf16>
    %c0_82 = arith.constant 0 : index
    %c0_83 = arith.constant 0 : index
    %c0_84 = arith.constant 0 : index
    %84 = vector.load %arg3[%c0_82, %c0_83, %c0_84] : memref<3x128x128xbf16, #tpu.memory_space<vmem>>, vector<1x128x128xbf16>
    %85 = vector.shape_cast %84 : vector<1x128x128xbf16> to vector<128x128xbf16>
    %cst_85 = arith.constant dense<0.000000e+00> : vector<16x128xf32>
    %86 = tpu.matmul %83, %85, %cst_85 {dimension_numbers = #tpu.dot_dimension_numbers<[1], [0], [0], [1], [0, 0, 1, 1], [], []>} : vector<16x128xbf16>, vector<128x128xbf16>, vector<16x128xf32> -> vector<16x128xf32>
    %87 = arith.addf %77, %86 : vector<16x128xf32>
    %c1_86 = arith.constant 1 : index
    %c1_87 = arith.constant 1 : index
    %c0_88 = arith.constant 0 : index
    %88 = vector.load %arg5[%c1_86, %c1_87, %c0_88] : memref<2x18x128xf32, #tpu.memory_space<vmem>>, vector<1x16x128xf32>
    %89 = vector.shape_cast %88 : vector<1x16x128xf32> to vector<16x128xf32>
    %90 = arith.truncf %89 : vector<16x128xf32> to vector<16x128xbf16>
    %c1_89 = arith.constant 1 : index
    %c0_90 = arith.constant 0 : index
    %c0_91 = arith.constant 0 : index
    %91 = vector.load %arg3[%c1_89, %c0_90, %c0_91] : memref<3x128x128xbf16, #tpu.memory_space<vmem>>, vector<1x128x128xbf16>
    %92 = vector.shape_cast %91 : vector<1x128x128xbf16> to vector<128x128xbf16>
    %cst_92 = arith.constant dense<0.000000e+00> : vector<16x128xf32>
    %93 = tpu.matmul %90, %92, %cst_92 {dimension_numbers = #tpu.dot_dimension_numbers<[1], [0], [0], [1], [0, 0, 1, 1], [], []>} : vector<16x128xbf16>, vector<128x128xbf16>, vector<16x128xf32> -> vector<16x128xf32>
    %94 = arith.addf %87, %93 : vector<16x128xf32>
    %c1_93 = arith.constant 1 : index
    %c2_94 = arith.constant 2 : index
    %c0_95 = arith.constant 0 : index
    %95 = vector.load %arg5[%c1_93, %c2_94, %c0_95] : memref<2x18x128xf32, #tpu.memory_space<vmem>>, vector<1x16x128xf32>
    %96 = vector.shape_cast %95 : vector<1x16x128xf32> to vector<16x128xf32>
    %97 = arith.truncf %96 : vector<16x128xf32> to vector<16x128xbf16>
    %c2_96 = arith.constant 2 : index
    %c0_97 = arith.constant 0 : index
    %c0_98 = arith.constant 0 : index
    %98 = vector.load %arg3[%c2_96, %c0_97, %c0_98] : memref<3x128x128xbf16, #tpu.memory_space<vmem>>, vector<1x128x128xbf16>
    %99 = vector.shape_cast %98 : vector<1x128x128xbf16> to vector<128x128xbf16>
    %cst_99 = arith.constant dense<0.000000e+00> : vector<16x128xf32>
    %100 = tpu.matmul %97, %99, %cst_99 {dimension_numbers = #tpu.dot_dimension_numbers<[1], [0], [0], [1], [0, 0, 1, 1], [], []>} : vector<16x128xbf16>, vector<128x128xbf16>, vector<16x128xf32> -> vector<16x128xf32>
    %101 = arith.addf %94, %100 : vector<16x128xf32>
    %cst_100 = arith.constant 0.000000e+00 : f32
    %102 = vector.broadcast %cst_100 : f32 to vector<16x128xf32>
    %103 = arith.maximumf %101, %102 : vector<16x128xf32>
    %c1_101 = arith.constant 1 : index
    %c0_102 = arith.constant 0 : index
    %c0_103 = arith.constant 0 : index
    %104 = vector.load %arg4[%c1_101, %c0_102, %c0_103] : memref<2x16x128xf32, #tpu.memory_space<vmem>>, vector<1x16x128xf32>
    %105 = vector.shape_cast %104 : vector<1x16x128xf32> to vector<16x128xf32>
    %106 = vector.shape_cast %103 : vector<16x128xf32> to vector<1x16x128xf32>
    tpu.vector_store %arg4[%c1_101, %c0_102, %c0_103], %106 {strides = array<i32>} : memref<2x16x128xf32, #tpu.memory_space<vmem>>, vector<1x16x128xf32>,
    return
  }
  func.func @transform_0(%arg0: i32) -> (i32, i32, i32) {
    %c0_i32 = arith.constant 0 : i32
    %c0_i32_0 = arith.constant 0 : i32
    %c0_i32_1 = arith.constant 0 : i32
    return %arg0, %c0_i32, %c0_i32_0 : i32, i32, i32
  }
  func.func @transform_1(%arg0: i32) -> (i32, i32, i32) {
    %c0_i32 = arith.constant 0 : i32
    %c0_i32_0 = arith.constant 0 : i32
    %c0_i32_1 = arith.constant 0 : i32
    %c0_i32_2 = arith.constant 0 : i32
    return %c0_i32, %c0_i32_0, %c0_i32_1 : i32, i32, i32
  }
  func.func @transform_2(%arg0: i32) -> (i32, i32, i32) {
    %c0_i32 = arith.constant 0 : i32
    %c0_i32_0 = arith.constant 0 : i32
    %c0_i32_1 = arith.constant 0 : i32
    %c0_i32_2 = arith.constant 0 : i32
    return %c0_i32, %c0_i32_0, %c0_i32_1 : i32, i32, i32
  }
  func.func @transform_3(%arg0: i32) -> (i32, i32, i32) {
    %c0_i32 = arith.constant 0 : i32
    %c0_i32_0 = arith.constant 0 : i32
    %c0_i32_1 = arith.constant 0 : i32
    return %arg0, %c0_i32, %c0_i32_0 : i32, i32, i32
  }
}

</mosaic_0001>

<bundles_post_ra>
// kernel: _lambda_.1
= control target key start
LH: loop header
LB: loop body
LE: loop exit
PB: predicated region body
PF: predicated region fallthrough
CT: control target
= control target key end

     0   :  { %v1844_v1 = vmov 0   ;;  %v1845_v3 = vmov 0.0   ;;  %vm47_vm0 = vsmask.f32 7424  ;;  %vm100_vm1 = vcmask 523264   ;;  %s2284_s1 = inlined_call_operand.vmem [shape: bf16[3,64,256], index: 1, kind: input, shape index: {}]   ;;  %s2285_s0 = inlined_call_operand.vmem [shape: bf16[2,18,64], index: 0, kind: input, shape index: {}]   ;;  %s2286_s2 = inlined_call_operand.vmem [shape: bf16[3,128,128], index: 2, kind: input, shape index: {}]   ;;  %s2287_s3 = inlined_call_operand.vmem [shape: f32[2,16,128], index: 3, kind: output, shape index: {}]  }
   0x1   :  { %v1870_v0 = vld [vmem:[%s2284_s1 + $0x44] ss:$8 sps:$4 sm:$0xff]   ;;  %136 = vmatprep.mubr.bf16.mxu0 %v1844_v1  ;;  %v1876_v2 = vld [vmem:[%s2284_s1 + $0x40] ss:$8 sps:$4 sm:$0xff]   ;;  %1603 = vmatprep.subr.bf16.mxu1 %v1845_v3  ;;  %15 = vst [vmem:[#allocation2] sm:$0x1] %v1845_v3 }
   0x2   :  { %16 = vst [vmem:[#allocation2 + $0x18] sm:$0x1] %v1845_v3  ;;  %17 = vst [vmem:[#allocation2 + $0x11] sm:$0x1] %v1845_v3  ;;  %104 = vmatprep.subr.bf16.mxu0 %v1870_v0  ;;  %v1887_v4 = vld [vmem:[%s2284_s1 + $0x54] ss:$8 sps:$4 sm:$0xff]  }
   0x3   :  { %18 = vst [vmem:[#allocation2 + $0x29] sm:$0x1] %v1845_v3  ;;  %105 = vmatpush1.bf16.msra.mxu0 %v1876_v2  ;;  %v1893_v5 = vld [vmem:[%s2284_s1 + $0x50] ss:$8 sps:$4 sm:$0xff]   ;;  %v1899_v6 = vld [vmem:[%s2284_s1 + $0x64] ss:$8 sps:$4 sm:$0xff]  }
   0x4   :  { %106 = vmatprep.subr.bf16.mxu0 %v1887_v4  ;;  %v1904_v7 = vld [vmem:[%s2284_s1 + $0x60] ss:$8 sps:$4 sm:$0xff]   ;;  %v20_v9 = vld [vmem:[%s2285_s0 + $0x4] sm:$0xf]  ;;  %v1917_v10 = vld [vmem:[%s2284_s1 + $0x74] ss:$8 sps:$4 sm:$0xff]  }
   0x5   :  { %v19_v8 = vld [vmem:[%s2285_s0] sm:$0xf]  ;;  %v1922_v12 = vld [vmem:[%s2285_s0 + $0x8] ss:$0 sps:$4 sm:$0x11]   ;;  %v1798_v39 = vld [vmem:[%s2286_s2 + $0x10] sm:$0xff]  }
   0x6   :  { %v1347_v11 = vcombine.low %v19_v8, %v20_v9  ;;  %v56_v15 = vshll.u32 %v1922_v12, 16  ;;  %v1929_v16 = vld [vmem:[%s2284_s1 + $0x70] ss:$8 sps:$4 sm:$0xff]   ;;  %v1935_v17 = vld [vmem:[%s2284_s1 + $0x4] ss:$8 sps:$4 sm:$0xff]   ;;  %v247_v36 = vrot.slane %v1922_v12, 1 }
   0x7   :  { %107 = vmatpush1.bf16.msra.mxu0 %v1893_v5  ;;  %v1941_v21 = vld [vmem:[%s2284_s1] ss:$8 sps:$4 sm:$0xff]   ;;  %v1948_v23 = vld [vmem:[%s2284_s1 + $0x14] ss:$8 sps:$4 sm:$0xff]   ;;  %v1441_v25 = vld [vmem:[%s2285_s0 + $0xc] sm:$0xf] }
   0x8   :  { %108 = vmatprep.subr.bf16.mxu0 %v1899_v6  ;;  %v49_v13 = vshrl.u32 %v1347_v11, 16  ;;  %v51_v14 = vshll.u32 %v1347_v11, 16  ;;  %v58_v19 = vrot.slane %v56_v15, 1  ;;  %v232_v24 = vld [vmem:[%s2285_s0] sm:$0xe]  ;;  %v1797_v32 = vld [vmem:[%s2286_s2 + $0x8] sm:$0xff]  }
   0x9   :  { %v1960_v26 = vld [vmem:[%s2285_s0 + $0x10] sm:$0xf]  ;;  %v1796_v28 = vld [vmem:[%s2286_s2] sm:$0xff]   ;;  %v1375_v30 = vcombine.low %v232_v24, %v20_v9  ;;  %v1994_v34 = vld [vmem:[%s2284_s1 + $0x34] ss:$8 sps:$4 sm:$0xff]   ;;  %vm245_vm2 = vcmask 1046528  }
   0xa   :  { %v53_v18 = vrot.slane %v51_v14, 1  ;;  %v1966_v27 = vld [vmem:[%s2284_s1 + $0x10] ss:$8 sps:$4 sm:$0xff]   ;;  %v1976_v29 = vld [vmem:[%s2284_s1 + $0x24] ss:$8 sps:$4 sm:$0xff]   ;;  %v1979_v31 = vcombine.low %v1441_v25, %v1960_v26  ;;  %1604 = vmatpush3.bf16.msra.mxu1 %v1796_v28  ;;  %vm1846_vm3 = vmmov 0  }
   0xb   :  { %109 = vmatpush1.bf16.msra.mxu0 %v1904_v7  ;;  %v1987_v33 = vld [vmem:[%s2284_s1 + $0x20] ss:$8 sps:$4 sm:$0xff]   ;;  %1605 = vmatprep.subr.bf16.mxu1 %v1845_v3  ;;  %v246_v35 = vrot.slane %v1375_v30, 1  ;;  %v1777_v37 = vld [vmem:[%s2284_s1 + $0x30] ss:$8 sps:$4 sm:$0xff]  }
   0xc   :  { %110 = vmatprep.subr.bf16.mxu0 %v1917_v10  ;;  %v54_v20 = vor.u32 %v53_v18, %v49_v13  ;;  %v710_v38 = vshll.u32 %v1979_v31, 16  ;;  %v1782_v40 = vld [vmem:[%s2284_s1 + $0x84] ss:$8 sps:$4 sm:$0xff]   ;;  %v1799_v41 = vld [vmem:[%s2286_s2 + $0x18] sm:$0xff]   ;;  %v1780_v42 = vld [vmem:[%s2284_s1 + $0x80] ss:$8 sps:$4 sm:$0xff]   ;;  %1619 = vmatprep.mubr.msk.bf16.mxu1 %vm1846_vm3, %v1845_v3 }
   0xd   :  { %v1785_v43 = vld [vmem:[%s2284_s1 + $0x94] ss:$8 sps:$4 sm:$0xff]   ;;  %v1800_v44 = vld [vmem:[%s2286_s2 + $0x20] sm:$0xff]   ;;  %v1783_v45 = vld [vmem:[%s2284_s1 + $0x90] ss:$8 sps:$4 sm:$0xff]   ;;  %v248_v50 = vsel %vm245_vm2, %v246_v35, %v247_v36  ;;  %v708_v52 = vshrl.u32 %v1979_v31, 16 }
   0xe   :  { %v59_v22 = vsel %vm47_vm0, %v54_v20, %v58_v19  ;;  %1606 = vmatpush3.bf16.msra.mxu1 %v1797_v32  ;;  %v1788_v46 = vld [vmem:[%s2284_s1 + $0xa4] ss:$8 sps:$4 sm:$0xff]   ;;  %v1786_v47 = vld [vmem:[%s2284_s1 + $0xa0] ss:$8 sps:$4 sm:$0xff]   ;;  %v1791_v48 = vld [vmem:[%s2284_s1 + $0xb4] ss:$8 sps:$4 sm:$0xff]  }
   0xf   :  { %111 = vmatpush1.bf16.msra.mxu0 %v1929_v16  ;;  %1607 = vmatprep.subr.bf16.mxu1 %v1845_v3  ;;  %v1789_v49 = vld [vmem:[%s2284_s1 + $0xb0] ss:$8 sps:$4 sm:$0xff]   ;;  %v1794_v51 = vld [vmem:[%s2285_s0 + $0x14] ss:$0 sps:$4 sm:$0x11]   ;;  %v712_v53 = vrot.slane %v710_v38, 1 }
  0x10   :  { %189 = vmatprep.subr.bf16.mxu0 %v1935_v17  ;;  %v715_v54 = vshll.u32 %v1794_v51, 16  ;;  %v1472_v58 = vld [vmem:[%s2285_s0 + $0xc] sm:$0xe]  ;;  %v903_v61 = vrot.slane %v1794_v51, 1  ;;  %v1821_v9 = vld [vmem:[%s2286_s2 + $0x30] sm:$0xff]   ;;  %v1804_v20 = vld [vmem:[%s2286_s2 + $0x40] sm:$0xff]  }
  0x11   :  { %v713_v55 = vor.u32 %v712_v53, %v708_v52  ;;  %v1481_v59 = vcombine.low %v1472_v58, %v1960_v26  ;;  %v1801_v63 = vld [vmem:[%s2286_s2 + $0x28] sm:$0xff]   ;;  %v1807_v24 = vld [vmem:[%s2286_s2 + $0x58] sm:$0xff]   ;;  %v1808_v25 = vld [vmem:[%s2286_s2 + $0x60] sm:$0xff]  }
  0x12   :  { %1357 = vmatmul.mubr.msk.bf16.vlgmr.msra.gmra.mrb[0].mxu0 %vm100_vm1, %v59_v22  ;;  %1608 = vmatpush3.bf16.msra.mxu1 %v1798_v39  ;;  %v717_v56 = vrot.slane %v715_v54, 1  ;;  %v1819_v8 = vld [vmem:[%s2286_s2 + $0x28] sm:$0xff]   ;;  %v1814_v28 = vld [vmem:[%s2286_s2 + $0x78] sm:$0xff]   ;;  %v1830_v52 = vld [vmem:[%s2286_s2 + $0x50] sm:$0xff]  }
  0x13   :  { %190 = vmatpush1.bf16.msra.mxu0 %v1941_v21  ;;  %221 = vmatprep.mubr.bf16.mxu0 %v1844_v1  ;;  %v902_v60 = vrot.slane %v1481_v59, 1  ;;  %v1805_v22 = vld [vmem:[%s2286_s2 + $0x48] sm:$0xff]   ;;  %v1822_v39 = vld [vmem:[%s2286_s2 + $0x98] sm:$0xff]   ;;  %v1832_v54 = vld [vmem:[%s2286_s2 + $0x60] sm:$0xff]  }
  0x14   :  { %191 = vmatprep.subr.bf16.mxu0 %v1948_v23  ;;  %1609 = vmatprep.subr.bf16.mxu1 %v1845_v3  ;;  %v718_v57 = vsel %vm47_vm0, %v713_v55, %v717_v56  ;;  %v1810_v26 = vld [vmem:[%s2286_s2 + $0x68] sm:$0xff]   ;;  %v1831_v53 = vld [vmem:[%s2286_s2 + $0x58] sm:$0xff]   ;;  %v1834_v56 = vld [vmem:[%s2286_s2 + $0x70] sm:$0xff]  }
  0x15   :  { %v904_v62 = vsel %vm245_vm2, %v902_v60, %v903_v61  ;;  %v1829_v51 = vld [vmem:[%s2286_s2 + $0x48] sm:$0xff]   ;;  %v1836_v58 = vld [vmem:[%s2286_s2 + $0x80] sm:$0xff]   ;;  %v1838_v60 = vld [vmem:[%s2286_s2 + $0x90] sm:$0xff]  }
  0x16   :  { %1610 = vmatpush3.bf16.msra.mxu1 %v1799_v41  ;;  %v1824_v41 = vld [vmem:[%s2286_s2 + $0xa0] sm:$0xff]   ;;  %v1833_v55 = vld [vmem:[%s2286_s2 + $0x68] sm:$0xff]   ;;  %v1839_v61 = vld [vmem:[%s2286_s2 + $0x98] sm:$0xff]  }
  0x17   :  { %192 = vmatpush1.bf16.msra.mxu0 %v1966_v27  ;;  %1611 = vmatprep.subr.bf16.mxu1 %v1845_v3  ;;  %v1837_v59 = vld [vmem:[%s2286_s2 + $0x88] sm:$0xff]  }
  0x18   :  { %193 = vmatprep.subr.bf16.mxu0 %v1976_v29 }
  0x1a   :  { %1612 = vmatpush3.bf16.msra.mxu1 %v1800_v44  ;;  %v1825_v44 = vld [vmem:[%s2286_s2 + $0xa8] sm:$0xff]  }
  0x1b   :  { %194 = vmatpush1.bf16.msra.mxu0 %v1987_v33  ;;  %1613 = vmatprep.subr.bf16.mxu1 %v1845_v3 }
  0x1c   :  { %195 = vmatprep.subr.bf16.mxu0 %v1994_v34 }
  0x1e   :  { %1614 = vmatpush3.bf16.msra.mxu1 %v1801_v63  ;;  %v1841_v63 = vld [vmem:[%s2286_s2 + $0xa8] sm:$0xff]  }
  0x1f   :  { %196 = vmatpush1.bf16.msra.mxu0 %v1777_v37  ;;  %1615 = vmatprep.subr.bf16.mxu1 %v1845_v3 }
  0x20   :  { %292 = vmatprep.subr.bf16.mxu0 %v1782_v40 }
  0x22   :  { %1366 = vmatmul.mubr.msk.bf16.vlgmr.msra.gmra.mrb[0].mxu0 %vm100_vm1, %v1347_v11 }
  0x23   :  { %293 = vmatpush1.bf16.msra.mxu0 %v1780_v42  ;;  %324 = vmatprep.mubr.bf16.mxu0 %v1844_v1 }
  0x24   :  { %294 = vmatprep.subr.bf16.mxu0 %v1785_v43 }
  0x27   :  { %295 = vmatpush1.bf16.msra.mxu0 %v1783_v45 }
  0x28   :  { %296 = vmatprep.subr.bf16.mxu0 %v1788_v46 }
  0x2b   :  { %297 = vmatpush1.bf16.msra.mxu0 %v1786_v47 }
  0x2c   :  { %298 = vmatprep.subr.bf16.mxu0 %v1791_v48 }
  0x2f   :  { %299 = vmatpush1.bf16.msra.mxu0 %v1789_v49 }
  0x30   :  { %762 = vmatprep.subr.bf16.mxu0 %v1870_v0  ;;  %v1802_v0 = vld [vmem:[%s2286_s2 + $0x30] sm:$0xff]  }
  0x31   :  { %1616 = vmatpush3.bf16.msra.mxu1 %v1802_v0  ;;  %v1842_v0 = vld [vmem:[%s2286_s2 + $0xb0] sm:$0xff]  }
  0x32   :  { %1384 = vmatmul.mubr.msk.bf16.vlgmr.msra.gmra.mrb[0].mxu0 %vm100_vm1, %v248_v50  ;;  %1617 = vmatprep.subr.bf16.mxu1 %v1845_v3 }
  0x33   :  { %763 = vmatpush1.bf16.msra.mxu0 %v1876_v2  ;;  %794 = vmatprep.mubr.bf16.mxu0 %v1844_v1  ;;  %v1809_v2 = vld [vmem:[%s2286_s2] sm:$0xff]  }
  0x34   :  { %764 = vmatprep.subr.bf16.mxu0 %v1887_v4  ;;  %v1811_v4 = vld [vmem:[%s2286_s2 + $0x8] sm:$0xff]  }
  0x37   :  { %765 = vmatpush1.bf16.msra.mxu0 %v1893_v5  ;;  %v1813_v5 = vld [vmem:[%s2286_s2 + $0x10] sm:$0xff]  }
  0x38   :  { %766 = vmatprep.subr.bf16.mxu0 %v1899_v6  ;;  %v1815_v6 = vld [vmem:[%s2286_s2 + $0x18] sm:$0xff]  }
  0x3b   :  { %767 = vmatpush1.bf16.msra.mxu0 %v1904_v7  ;;  %v1817_v7 = vld [vmem:[%s2286_s2 + $0x20] sm:$0xff]  }
  0x3c   :  { %768 = vmatprep.subr.bf16.mxu0 %v1917_v10  ;;  %v1823_v10 = vld [vmem:[%s2286_s2 + $0x38] sm:$0xff]  }
  0x3f   :  { %769 = vmatpush1.bf16.msra.mxu0 %v1929_v16 }
  0x40   :  { %847 = vmatprep.subr.bf16.mxu0 %v1935_v17 }
  0x42   :  { %1462 = vmatmul.mubr.msk.bf16.vlgmr.msra.gmra.mrb[4].mxu0 %vm100_vm1, %v718_v57  ;;  %v1835_v57 = vld [vmem:[%s2286_s2 + $0x78] sm:$0xff]  }
  0x43   :  { %848 = vmatpush1.bf16.msra.mxu0 %v1941_v21  ;;  %879 = vmatprep.mubr.bf16.mxu0 %v1844_v1 }
  0x44   :  { %849 = vmatprep.subr.bf16.mxu0 %v1948_v23  ;;  %v1806_v23 = vld [vmem:[%s2286_s2 + $0x50] sm:$0xff]  }
  0x47   :  { %850 = vmatpush1.bf16.msra.mxu0 %v1966_v27  ;;  %v1812_v27 = vld [vmem:[%s2286_s2 + $0x70] sm:$0xff]  }
  0x48   :  { %851 = vmatprep.subr.bf16.mxu0 %v1976_v29  ;;  %v1816_v29 = vld [vmem:[%s2286_s2 + $0x80] sm:$0xff]  }
  0x4b   :  { %852 = vmatpush1.bf16.msra.mxu0 %v1987_v33 }
  0x4c   :  { %853 = vmatprep.subr.bf16.mxu0 %v1994_v34 }
  0x4f   :  { %854 = vmatpush1.bf16.msra.mxu0 %v1777_v37  ;;  %v1820_v37 = vld [vmem:[%s2286_s2 + $0x90] sm:$0xff]  }
  0x50   :  { %948 = vmatprep.subr.bf16.mxu0 %v1782_v40 }
  0x52   :  { %1471 = vmatmul.mubr.msk.bf16.vlgmr.msra.gmra.mrb[4].mxu0 %vm100_vm1, %v1979_v31  ;;  %v1818_v31 = vld [vmem:[%s2286_s2 + $0x88] sm:$0xff]  }
  0x53   :  { %949 = vmatpush1.bf16.msra.mxu0 %v1780_v42  ;;  %980 = vmatprep.mubr.bf16.mxu0 %v1844_v1  ;;  %v1803_v1 = vld [vmem:[%s2286_s2 + $0x38] sm:$0xff]  }
  0x54   :  { %950 = vmatprep.subr.bf16.mxu0 %v1785_v43  ;;  %1618 = vmatpush3.bf16.msra.mxu1 %v1803_v1  ;;  %v1843_v1 = vld [vmem:[%s2286_s2 + $0xb8] sm:$0xff]  }
  0x55   :  { %1623 = vmatprep.subr.bf16.mxu1 %v1845_v3 }
  0x57   :  { %951 = vmatpush1.bf16.msra.mxu0 %v1783_v45  ;;  %v1826_v45 = vld [vmem:[%s2286_s2 + $0xb0] sm:$0xff]  }
  0x58   :  { %952 = vmatprep.subr.bf16.mxu0 %v1788_v46  ;;  %v1827_v46 = vld [vmem:[%s2286_s2 + $0xb8] sm:$0xff]  }
  0x5b   :  { %953 = vmatpush1.bf16.msra.mxu0 %v1786_v47 }
  0x5c   :  { %954 = vmatprep.subr.bf16.mxu0 %v1791_v48 }
  0x5f   :  { %955 = vmatpush1.bf16.msra.mxu0 %v1789_v49  ;;  %v1828_v49 = vld [vmem:[%s2286_s2 + $0x40] sm:$0xff]  }
  0x60   :  { %1663 = vmatprep.subr.bf16.mxu0 %v1845_v3 }
  0x62   :  { %1490 = vmatmul.mubr.msk.bf16.vlgmr.msra.gmra.mrb[4].mxu0 %vm100_vm1, %v904_v62  ;;  %v1840_v62 = vld [vmem:[%s2286_s2 + $0xa0] sm:$0xff]  }
  0x63   :  { %1679 = vmatprep.mubr.msk.bf16.mxu0 %vm1846_vm3, %v1845_v3  ;;  %1664 = vmatpush3.bf16.msra.mxu0 %v1809_v2 }
  0x64   :  { %1665 = vmatprep.subr.bf16.mxu0 %v1845_v3 }
  0x67   :  { %1666 = vmatpush3.bf16.msra.mxu0 %v1811_v4 }
  0x68   :  { %1667 = vmatprep.subr.bf16.mxu0 %v1845_v3 }
  0x6b   :  { %1668 = vmatpush3.bf16.msra.mxu0 %v1813_v5 }
  0x6c   :  { %1669 = vmatprep.subr.bf16.mxu0 %v1845_v3 }
  0x6f   :  { %1670 = vmatpush3.bf16.msra.mxu0 %v1815_v6 }
  0x70   :  { %1671 = vmatprep.subr.bf16.mxu0 %v1845_v3 }
  0x73   :  { %1672 = vmatpush3.bf16.msra.mxu0 %v1817_v7 }
  0x74   :  { %1673 = vmatprep.subr.bf16.mxu0 %v1845_v3 }
  0x77   :  { %1674 = vmatpush3.bf16.msra.mxu0 %v1819_v8 }
  0x78   :  { %1675 = vmatprep.subr.bf16.mxu0 %v1845_v3 }
  0x7b   :  { %1676 = vmatpush3.bf16.msra.mxu0 %v1821_v9 }
  0x7c   :  { %1677 = vmatprep.subr.bf16.mxu0 %v1845_v3 }
  0x7f   :  { %1678 = vmatpush3.bf16.msra.mxu0 %v1823_v10 }
 0x105   :  { %v326_v11 = vpop.f32.mrb[0].mxu0 }
 0x106   :  { %v339_v12 = vmax.f32 %v326_v11, 0.0  ;;  %v2125_v13 = vpop.f32.mrb[1].mxu0 }
 0x107   :  { %v330_v14 = vpop.f32.mrb[2].mxu0 }
 0x108   :  { %341 = vst [vmem:[#allocation2 + $0x1] sm:$0xff] %v339_v12  ;;  %v340_v15 = vmax.f32 %v330_v14, 0.0  ;;  %v2127_v16 = vpop.f32.mrb[3].mxu0 }
 0x10a   :  { %342 = vst [vmem:[#allocation2 + $0x9] sm:$0xff] %v340_v15  ;;  %v455_v17 = vpack.c.bf16 %v340_v15, %v339_v12 }
 0x10f   :  { %v343_v18 = vld [vmem:[#allocation2] sm:$0xff] }
 0x111   :  { %v344_v19 = vld [vmem:[#allocation2 + $0x8] sm:$0xff] }
 0x112   :  { %v345_v21 = vpack.c.bf16 %v344_v19, %v343_v18  ;;  %v564_v47 = vld [vmem:[#allocation2 + $0x2] sm:$0xff]  ;;  %v565_v48 = vld [vmem:[#allocation2 + $0xa] sm:$0xff] }
 0x113   :  { %v566_v50 = vpack.c.bf16 %v565_v48, %v564_v47 }
 0x114   :  { %1620 = vmatmul.mubr.bf16.vlgmr.msra.gmra.mrb[0].mxu1 %v345_v21 }
 0x115   :  { %1624 = vmatpush3.bf16.msra.mxu1 %v1804_v20  ;;  %1639 = vmatprep.mubr.msk.bf16.mxu1 %vm1846_vm3, %v1845_v3 }
 0x116   :  { %1625 = vmatprep.subr.bf16.mxu1 %v1845_v3 }
 0x119   :  { %1626 = vmatpush3.bf16.msra.mxu1 %v1805_v22 }
 0x11a   :  { %1627 = vmatprep.subr.bf16.mxu1 %v1845_v3 }
 0x11d   :  { %1628 = vmatpush3.bf16.msra.mxu1 %v1806_v23 }
 0x11e   :  { %1629 = vmatprep.subr.bf16.mxu1 %v1845_v3 }
 0x121   :  { %1630 = vmatpush3.bf16.msra.mxu1 %v1807_v24 }
 0x122   :  { %1631 = vmatprep.subr.bf16.mxu1 %v1845_v3 }
 0x125   :  { %1632 = vmatpush3.bf16.msra.mxu1 %v1808_v25 }
 0x126   :  { %1633 = vmatprep.subr.bf16.mxu1 %v1845_v3 }
 0x129   :  { %1634 = vmatpush3.bf16.msra.mxu1 %v1810_v26 }
 0x12a   :  { %1635 = vmatprep.subr.bf16.mxu1 %v1845_v3 }
 0x12d   :  { %1636 = vmatpush3.bf16.msra.mxu1 %v1812_v27 }
 0x12e   :  { %1637 = vmatprep.subr.bf16.mxu1 %v1845_v3 }
 0x131   :  { %1638 = vmatpush3.bf16.msra.mxu1 %v1814_v28 }
 0x132   :  { %1643 = vmatprep.subr.bf16.mxu1 %v1845_v3 }
 0x134   :  { %1640 = vmatmul.mubr.bf16.vlgmr.msra.gmra.mrb[4].mxu1 %v455_v17 }
 0x135   :  { %1644 = vmatpush3.bf16.msra.mxu1 %v1816_v29  ;;  %v982_v30 = vpop.f32.mrb[4].mxu0  ;;  %1659 = vmatprep.mubr.msk.bf16.mxu1 %vm1846_vm3, %v1845_v3 }
 0x136   :  { %v995_v32 = vmax.f32 %v982_v30, 0.0  ;;  %v2171_v33 = vpop.f32.mrb[5].mxu0  ;;  %1645 = vmatprep.subr.bf16.mxu1 %v1845_v3 }
 0x137   :  { %v986_v34 = vpop.f32.mrb[6].mxu0 }
 0x138   :  { %998 = vst [vmem:[#allocation2 + $0x19] sm:$0xff] %v995_v32  ;;  %v996_v35 = vmax.f32 %v986_v34, 0.0  ;;  %v2174_v36 = vpop.f32.mrb[7].mxu0 }
 0x139   :  { %1646 = vmatpush3.bf16.msra.mxu1 %v1818_v31 }
 0x13a   :  { %999 = vst [vmem:[#allocation2 + $0x21] sm:$0xff] %v996_v35  ;;  %1647 = vmatprep.subr.bf16.mxu1 %v1845_v3  ;;  %v1112_v38 = vpack.c.bf16 %v996_v35, %v995_v32 }
 0x13d   :  { %1648 = vmatpush3.bf16.msra.mxu1 %v1820_v37 }
 0x13e   :  { %1649 = vmatprep.subr.bf16.mxu1 %v1845_v3 }
 0x13f   :  { %v1000_v40 = vld [vmem:[#allocation2 + $0x18] sm:$0xff] }
 0x141   :  { %1650 = vmatpush3.bf16.msra.mxu1 %v1822_v39  ;;  %v1001_v42 = vld [vmem:[#allocation2 + $0x20] sm:$0xff] }
 0x142   :  { %1651 = vmatprep.subr.bf16.mxu1 %v1845_v3  ;;  %v1002_v43 = vpack.c.bf16 %v1001_v42, %v1000_v40  ;;  %v1220_v2 = vld [vmem:[#allocation2 + $0x1a] sm:$0xff]  ;;  %v1221_v4 = vld [vmem:[#allocation2 + $0x22] sm:$0xff] }
 0x143   :  { %v1222_v5 = vpack.c.bf16 %v1221_v4, %v1220_v2 }
 0x144   :  { %1680 = vmatmul.mubr.bf16.vlgmr.msra.gmra.mrb[8].mxu0 %v1002_v43 }
 0x145   :  { %1652 = vmatpush3.bf16.msra.mxu1 %v1824_v41 }
 0x146   :  { %1653 = vmatprep.subr.bf16.mxu1 %v1845_v3 }
 0x149   :  { %1654 = vmatpush3.bf16.msra.mxu1 %v1825_v44 }
 0x14a   :  { %1655 = vmatprep.subr.bf16.mxu1 %v1845_v3 }
 0x14d   :  { %1656 = vmatpush3.bf16.msra.mxu1 %v1826_v45 }
 0x14e   :  { %1657 = vmatprep.subr.bf16.mxu1 %v1845_v3 }
 0x151   :  { %1658 = vmatpush3.bf16.msra.mxu1 %v1827_v46 }
 0x152   :  { %1683 = vmatprep.subr.bf16.mxu1 %v1845_v3 }
 0x154   :  { %1660 = vmatmul.mubr.bf16.vlgmr.msra.gmra.mrb[4].mxu1 %v566_v50 }
 0x155   :  { %1684 = vmatpush3.bf16.msra.mxu1 %v1828_v49  ;;  %1699 = vmatprep.mubr.msk.bf16.mxu1 %vm1846_vm3, %v1845_v3 }
 0x156   :  { %1685 = vmatprep.subr.bf16.mxu1 %v1845_v3 }
 0x159   :  { %1686 = vmatpush3.bf16.msra.mxu1 %v1829_v51 }
 0x15a   :  { %1687 = vmatprep.subr.bf16.mxu1 %v1845_v3 }
 0x15d   :  { %1688 = vmatpush3.bf16.msra.mxu1 %v1830_v52 }
 0x15e   :  { %1689 = vmatprep.subr.bf16.mxu1 %v1845_v3 }
 0x161   :  { %1690 = vmatpush3.bf16.msra.mxu1 %v1831_v53 }
 0x162   :  { %1691 = vmatprep.subr.bf16.mxu1 %v1845_v3 }
 0x165   :  { %1692 = vmatpush3.bf16.msra.mxu1 %v1832_v54 }
 0x166   :  { %1693 = vmatprep.subr.bf16.mxu1 %v1845_v3 }
 0x169   :  { %1694 = vmatpush3.bf16.msra.mxu1 %v1833_v55 }
 0x16a   :  { %1695 = vmatprep.subr.bf16.mxu1 %v1845_v3 }
 0x16d   :  { %1696 = vmatpush3.bf16.msra.mxu1 %v1834_v56 }
 0x16e   :  { %1697 = vmatprep.subr.bf16.mxu1 %v1845_v3 }
 0x171   :  { %1698 = vmatpush3.bf16.msra.mxu1 %v1835_v57 }
 0x172   :  { %1703 = vmatprep.subr.bf16.mxu1 %v1845_v3 }
 0x174   :  { %1700 = vmatmul.mubr.bf16.vlgmr.msra.gmra.mrb[8].mxu1 %v1112_v38 }
 0x175   :  { %1704 = vmatpush3.bf16.msra.mxu1 %v1836_v58  ;;  %1719 = vmatprep.mubr.msk.bf16.mxu1 %vm1846_vm3, %v1845_v3 }
 0x176   :  { %1705 = vmatprep.subr.bf16.mxu1 %v1845_v3 }
 0x179   :  { %1706 = vmatpush3.bf16.msra.mxu1 %v1837_v59 }
 0x17a   :  { %1707 = vmatprep.subr.bf16.mxu1 %v1845_v3 }
 0x17d   :  { %1708 = vmatpush3.bf16.msra.mxu1 %v1838_v60 }
 0x17e   :  { %1709 = vmatprep.subr.bf16.mxu1 %v1845_v3 }
 0x181   :  { %1710 = vmatpush3.bf16.msra.mxu1 %v1839_v61 }
 0x182   :  { %1711 = vmatprep.subr.bf16.mxu1 %v1845_v3 }
 0x185   :  { %1712 = vmatpush3.bf16.msra.mxu1 %v1840_v62 }
 0x186   :  { %1713 = vmatprep.subr.bf16.mxu1 %v1845_v3 }
 0x189   :  { %1714 = vmatpush3.bf16.msra.mxu1 %v1841_v63 }
 0x18a   :  { %1715 = vmatprep.subr.bf16.mxu1 %v1845_v3 }
 0x18d   :  { %1716 = vmatpush3.bf16.msra.mxu1 %v1842_v0 }
 0x18e   :  { %1717 = vmatprep.subr.bf16.mxu1 %v1845_v3 }
 0x191   :  { %1718 = vmatpush3.bf16.msra.mxu1 %v1843_v1 }
 0x194   :  { %1720 = vmatmul.mubr.bf16.vlgmr.msra.gmra.mrb[8].mxu1 %v1222_v5 }
 0x1e7   :  { %v444_v6 = vpop.f32.mrb[0].mxu1 }
 0x1e8   :  { %v451_v7 = vadd.f32 %v444_v6, %v2125_v13  ;;  %v1621_v8 = vpop.f32.mrb[1].mxu1 }
 0x1e9   :  { %v447_v9 = vpop.f32.mrb[2].mxu1 }
 0x1ea   :  { %v452_v10 = vadd.f32 %v447_v9, %v2127_v16  ;;  %v1622_v11 = vpop.f32.mrb[3].mxu1 }
 0x217   :  { %v1101_v12 = vpop.f32.mrb[8].mxu0 }
 0x218   :  { %v1108_v14 = vadd.f32 %v1101_v12, %v2171_v33  ;;  %v1681_v15 = vpop.f32.mrb[9].mxu0 }
 0x219   :  { %v1104_v17 = vpop.f32.mrb[10].mxu0 }
 0x21a   :  { %v1109_v3 = vadd.f32 %v1104_v17, %v2174_v36  ;;  %v1682_v18 = vpop.f32.mrb[11].mxu0 }
 0x227   :  { %v666_v19 = vpop.f32.mrb[4].mxu1 }
 0x228   :  { %v1723_v20 = vadd.f32 %v666_v19, %v451_v7  ;;  %v1661_v21 = vpop.f32.mrb[5].mxu1 }
 0x229   :  { %v669_v22 = vpop.f32.mrb[6].mxu1 }
 0x22a   :  { %v675_v23 = vmax.f32 %v1723_v20, 0.0  ;;  %v1724_v24 = vadd.f32 %v669_v22, %v452_v10  ;;  %v1662_v13 = vpop.f32.mrb[7].mxu1 }
 0x22c   :  { %677 = vst [vmem:[%s2287_s3] sm:$0xff] %v675_v23  ;;  %v676_v16 = vmax.f32 %v1724_v24, 0.0 }
 0x22e   :  { %678 = vst [vmem:[%s2287_s3 + $0x8] sm:$0xff] %v676_v16 }
 0x267   :  { %v1321_v25 = vpop.f32.mrb[8].mxu1 }
 0x268   :  { %v1725_v26 = vadd.f32 %v1321_v25, %v1108_v14  ;;  %v1721_v27 = vpop.f32.mrb[9].mxu1 }
 0x269   :  { %v1324_v28 = vpop.f32.mrb[10].mxu1 }
 0x26a   :  { %v1330_v29 = vmax.f32 %v1725_v26, 0.0  ;;  %v1726_v30 = vadd.f32 %v1324_v28, %v1109_v3  ;;  %v1722_v31 = vpop.f32.mrb[11].mxu1 }
 0x26c   :  { %1547 = vst [vmem:[%s2287_s3 + $0x10] sm:$0xff] %v1330_v29  ;;  %v1331_v32 = vmax.f32 %v1726_v30, 0.0 }
 0x26e   :  { %1548 = vst [vmem:[%s2287_s3 + $0x18] sm:$0xff] %v1331_v32 }

</bundles_post_ra>
